<compile_context>
chip_gen: v6e
topology: v6e:2x2x1
jax: 0.10.0
libtpu: 0.0.40
codegen_flags: <defaults>
</compile_context>

<pallas_src>
import functools

import jax
import jax.numpy as jnp
from jax.experimental import pallas as pl
from jax.experimental.pallas import tpu as pltpu


_LANES = 128
_SUBLANES = 8
_MAX_TILE_ROWS = 4096          # 4096 x 128 x 4B = 2 MiB per f32 input block


def _round_up(x, m):
    return ((x + m - 1) // m) * m


def _cdiv(a, b):
    return (a + b - 1) // b


def _rows_to_8(x):
    """Fold (rows, 128) -> (8, 128) with sublane-aligned VALU adds only."""
    rows = x.shape[0]                      # static; always a multiple of 8
    extra = None
    while rows > 8:
        if rows % 16 == 0:                 # halve (both halves stay 8-aligned)
            rows //= 2
            x = x[:rows, :] + x[rows:, :]
        else:                              # rows % 16 == 8: peel the last 8 rows
            rows -= 8
            tail = x[rows:rows + 8, :]
            extra = tail if extra is None else extra + tail
            x = x[:rows, :]
    return x if extra is None else x + extra


def _myloss_kernel(pred_ref, pos_ref, out_ref, *,
                   targeted, dmax, dmin, tile_rows, blocks_per_core,
                   total_valid, full_blocks, padded_blocks):
    c = pl.program_id(0)                   # core ("parallel") axis
    i = pl.program_id(1)                   # block ("arbitrary") reduction axis
    g = c * blocks_per_core + i            # global (unclamped) block index

    @pl.when(i == 0)
    def _init():
        out_ref[...] = jnp.zeros_like(out_ref)

    pred = pred_ref[...]                                   # (tile_rows, 128) f32
    # Matches F.pairwise_distance: (pred*10 - pos*10) + eps, eps on the diff.
    d = (pred - pos_ref[...]) * 10.0 + 1e-6
    sq = d * d

    # Pair-partner sum along lanes.  Each (x, y) pair occupies lanes (2k, 2k+1).
    # One lane rotation (XLU slot, ~free) brings the neighbour's square in; the
    # lanes where the rotation delivered the true partner (lane ^ 1) are found
    # by rotating a lane iota with the *same* op, so the result does not depend
    # on the rotate-direction convention.
    lane = jax.lax.broadcasted_iota(jnp.int32, (1, _LANES), 1)
    rolled_lane = pltpu.roll(lane, shift=1, axis=1)
    valid_pair = rolled_lane == jnp.bitwise_xor(lane, 1)   # (1, 128) bool

    temp2 = sq + pltpu.roll(sq, shift=1, axis=1)
    temp = jnp.sqrt(temp2)                                 # ||diff||_2 at valid lanes

    # `targeted` is a compile-time constant: emit only the live hinge branch.
    if targeted == 1.0:
        hinge = jnp.maximum(dmin - temp, 0.0)
    elif targeted == 0.0:
        hinge = jnp.maximum(temp - dmax, 0.0)
    else:
        hinge = ((1.0 - targeted) * jnp.maximum(temp - dmax, 0.0)
                 + targeted * jnp.maximum(dmin - temp, 0.0))

    def _accumulate(keep):
        # Select (not multiply) so garbage/NaN in pad or unfetched rows cannot leak.
        contrib = jnp.where(keep, hinge, 0.0)
        out_ref[0] += _rows_to_8(contrib)                  # (8,128) vector accumulator

    if full_blocks >= padded_blocks:
        # Every block is fully valid: never pay for element masking.
        _accumulate(valid_pair)
    else:
        @pl.when(g < full_blocks)
        def _bulk():
            _accumulate(valid_pair)

        @pl.when(g >= full_blocks)
        def _tail():
            # Ragged last block / padded lanes / duplicated overflow blocks:
            # mask by the global flat element index.  (int32 is fine for N < ~1e9.)
            row = jax.lax.broadcasted_iota(jnp.int32, (tile_rows, 1), 0)
            gidx = (g * tile_rows + row) * _LANES + lane
            _accumulate(jnp.logical_and(valid_pair, gidx < total_valid))


def my_loss(pred, pos, targeted, dmax, dmin):
    """JAX/Pallas equivalent of MyLoss.forward(pred, pos, TARGETED, dmax, dmin).

    `targeted`, `dmax`, `dmin` are compile-time Python numbers (TARGETED is a
    module-level constant in the original code).
    """
    pred = jnp.asarray(pred, jnp.float32)
    n_rows = int(pred.shape[0])
    if n_rows == 0:
        return jnp.float32(jnp.nan)        # torch: mean over an empty tensor is NaN
    targeted = float(targeted)
    untargeted_bcast = (targeted == 0.0)

    total_valid = 2 * n_rows
    # Flatten (N,2) row-major -> (2N,) is a free bitcast.  Pad (only when
    # needed) to one (8,128) register tile so the slab reshape is exact, then
    # view as a dense (rows, 128) slab.
    padded = _round_up(total_valid, _SUBLANES * _LANES)

    def _to_slab(x2):
        flat = jnp.reshape(x2, (-1,))
        if padded != total_valid:
            flat = jnp.pad(flat, (0, padded - total_valid))
        return jnp.reshape(flat, (padded // _LANES, _LANES))

    pred_slab = _to_slab(pred)
    rows = padded // _LANES                          # multiple of 8
    tile_rows = min(_MAX_TILE_ROWS, rows)            # multiple of 8
    block_elems = tile_rows * _LANES
    n_blocks = _cdiv(rows, tile_rows)
    n_cores = 2 if n_blocks >= 2 else 1              # v7x megacore split (no-op on 1-TC)
    blocks_per_core = _cdiv(n_blocks, n_cores)
    padded_blocks = n_cores * blocks_per_core
    full_blocks = total_valid // block_elems         # blocks needing no element mask
    last_block = n_blocks - 1

    if padded_blocks > n_blocks:
        # Clamp duplicated overflow blocks of the uneven core split; their
        # contribution is masked to zero inside the kernel.
        def _slab_map(c, i):
            return (jnp.minimum(c * blocks_per_core + i, last_block), 0)
    else:
        def _slab_map(c, i):
            return (c * blocks_per_core + i, 0)

    pred_spec = pl.BlockSpec((tile_rows, _LANES), _slab_map)

    if untargeted_bcast:
        # TARGETED == 0: pos is a single (x, y).  Keep it as one resident
        # (1,128) interleaved row -- never materialize the (N,2) broadcast.
        pos_xy = jnp.reshape(jnp.asarray(pos, jnp.float32), (-1,))[:2]
        pos_arg = jnp.tile(jnp.reshape(pos_xy, (1, 2)), (1, _LANES // 2))
        pos_spec = pl.BlockSpec((1, _LANES), lambda c, i: (0, 0))
        n_stream = 1
    else:
        pos_arg = _to_slab(jnp.asarray(pos, jnp.float32))
        pos_spec = pred_spec
        n_stream = 2

    kernel = functools.partial(
        _myloss_kernel,
        targeted=targeted, dmax=float(dmax), dmin=float(dmin),
        tile_rows=tile_rows, blocks_per_core=blocks_per_core,
        total_valid=total_valid, full_blocks=full_blocks,
        padded_blocks=padded_blocks)

    # Real footprint: double-buffered streamed inputs + tiny out/pos blocks.
    vmem_limit = int(n_stream * 2 * block_elems * 4 + (8 << 20))

    partials = pl.pallas_call(
        kernel,
        out_shape=jax.ShapeDtypeStruct((n_cores, _SUBLANES, _LANES), jnp.float32),
        grid=(n_cores, blocks_per_core),
        in_specs=[pred_spec, pos_spec],
        out_specs=pl.BlockSpec((1, _SUBLANES, _LANES), lambda c, i: (c, 0, 0)),
        compiler_params=pltpu.CompilerParams(
            dimension_semantics=("parallel", "arbitrary"),
            vmem_limit_bytes=vmem_limit),
    )(pred_slab, pos_arg)

    # Final cross-lane reduce of the tiny (n_cores, 8, 128) partials + mean in XLA.
    return jnp.sum(partials) / jnp.float32(n_rows)


def _ref_loss(pred, pos, targeted, dmax, dmin):
    """Pure-JAX reference reproducing the torch forward."""
    pred = jnp.asarray(pred, jnp.float32)
    targeted = float(targeted)
    if targeted == 0.0:
        pos = jnp.broadcast_to(
            jnp.reshape(jnp.asarray(pos, jnp.float32), (1, 2)), pred.shape)
    else:
        pos = jnp.asarray(pos, jnp.float32)
    diff = (pred - pos) * 10.0 + 1e-6            # F.pairwise_distance eps=1e-6
    temp = jnp.sqrt(jnp.sum(diff * diff, axis=-1))
    return jnp.mean((1.0 - targeted) * jnp.maximum(temp - dmax, 0.0)
                    + targeted * jnp.maximum(dmin - temp, 0.0))


if __name__ == "__main__":
    # TODO(synk): the torch forward mutates its pred/pos arguments in place
    # (pred[:,0] *= 10); JAX is functional so that side effect is not
    # reproduced -- the returned loss value is identical.
    key = jax.random.PRNGKey(0)
    k1, k2, k3, k4 = jax.random.split(key, 4)
    dmax, dmin = 5.0, 2.0

    # Small demo (N=8), both TARGETED paths.
    N = 8
    pred = jax.random.normal(k1, (N, 2), dtype=jnp.float32)
    pos = jax.random.normal(k2, (N, 2), dtype=jnp.float32)
    pos_vec = jax.random.normal(k3, (2,), dtype=jnp.float32)

    loss_t = my_loss(pred, pos, 1, dmax, dmin)
    loss_u = my_loss(pred, pos_vec, 0, dmax, dmin)
    jax.block_until_ready((loss_t, loss_u))
    ref_t = _ref_loss(pred, pos, 1, dmax, dmin)
    ref_u = _ref_loss(pred, pos_vec, 0, dmax, dmin)
    assert jnp.allclose(loss_t, ref_t, atol=1e-5, rtol=1e-5), (float(loss_t), float(ref_t))
    assert jnp.allclose(loss_u, ref_u, atol=1e-5, rtol=1e-5), (float(loss_u), float(ref_u))

    # Larger N: exercises multi-block grid, 2-core split, ragged-tail masking,
    # the exactly-aligned (mask-free) path and duplicated-block clamping.
    for n_big in (300_000, 524_288, 600_000):
        kp, kq = jax.random.split(jax.random.fold_in(k4, n_big))
        pred_b = jax.random.normal(kp, (n_big, 2), dtype=jnp.float32)
        pos_b = jax.random.normal(kq, (n_big, 2), dtype=jnp.float32)
        lt = my_loss(pred_b, pos_b, 1, dmax, dmin)
        lu = my_loss(pred_b, pos_vec, 0, dmax, dmin)
        jax.block_until_ready((lt, lu))
        rt = _ref_loss(pred_b, pos_b, 1, dmax, dmin)
        ru = _ref_loss(pred_b, pos_vec, 0, dmax, dmin)
        assert jnp.allclose(lt, rt, atol=1e-4, rtol=1e-4), (n_big, float(lt), float(rt))
        assert jnp.allclose(lu, ru, atol=1e-4, rtol=1e-4), (n_big, float(lu), float(ru))

    print("KERNEL_OK")
</pallas_src>

<mosaic_0001>
module attributes {stable_mosaic.version = 11 : i64} {
  func.func @_myloss_kernel(%arg0: i32, %arg1: i32, %arg2: memref<8x128xf32, #tpu.memory_space<vmem>>, %arg3: memref<8x128xf32, #tpu.memory_space<vmem>>, %arg4: memref<1x8x128xf32, #tpu.memory_space<vmem>>) attributes {dimension_semantics = [#tpu.dimension_semantics<parallel>, #tpu.dimension_semantics<arbitrary>], iteration_bounds = array<i64: 1, 1>, scalar_prefetch = 0 : i64, scratch_operands = 0 : i64, tpu.core_type = #tpu.core_type<tc>, window_params = [{transform_indices = @transform_0, window_bounds = array<i64: 8, 128>}, {transform_indices = @transform_1, window_bounds = array<i64: 8, 128>}, {transform_indices = @transform_2, window_bounds = array<i64: 1, 8, 128>}]} {
    %c1_i32 = arith.constant 1 : i32
    %0 = arith.muli %arg0, %c1_i32 : i32
    %1 = arith.addi %0, %arg1 : i32
    %c0_i32 = arith.constant 0 : i32
    %2 = arith.cmpi eq, %arg1, %c0_i32 : i32
    %3 = arith.extui %2 : i1 to i32
    %c0_i32_0 = arith.constant 0 : i32
    %4 = arith.cmpi ne, %3, %c0_i32_0 : i32
    scf.if %4 {
      %cst_14 = arith.constant 0.000000e+00 : f32
      %31 = vector.broadcast %cst_14 : f32 to vector<1x8x128xf32>
      %c0_15 = arith.constant 0 : index
      %c0_16 = arith.constant 0 : index
      %c0_17 = arith.constant 0 : index
      %32 = vector.load %arg4[%c0_15, %c0_16, %c0_17] : memref<1x8x128xf32, #tpu.memory_space<vmem>>, vector<1x8x128xf32>
      tpu.vector_store %arg4[%c0_15, %c0_16, %c0_17], %31 {strides = array<i32>} : memref<1x8x128xf32, #tpu.memory_space<vmem>>, vector<1x8x128xf32>,
    } else {
    }
    %c0 = arith.constant 0 : index
    %c0_1 = arith.constant 0 : index
    %5 = vector.load %arg2[%c0, %c0_1] : memref<8x128xf32, #tpu.memory_space<vmem>>, vector<8x128xf32>
    %c0_2 = arith.constant 0 : index
    %c0_3 = arith.constant 0 : index
    %6 = vector.load %arg3[%c0_2, %c0_3] : memref<8x128xf32, #tpu.memory_space<vmem>>, vector<8x128xf32>
    %7 = arith.subf %5, %6 : vector<8x128xf32>
    %cst = arith.constant 1.000000e+01 : f32
    %8 = vector.broadcast %cst : f32 to vector<8x128xf32>
    %9 = arith.mulf %7, %8 : vector<8x128xf32>
    %cst_4 = arith.constant 9.99999997E-7 : f32
    %10 = vector.broadcast %cst_4 : f32 to vector<8x128xf32>
    %11 = arith.addf %9, %10 : vector<8x128xf32>
    %12 = arith.mulf %11, %11 : vector<8x128xf32>
    %13 = tpu.iota {dimensions = array<i32: 1>} : vector<1x128xi32>
    %c1_i32_5 = arith.constant 1 : i32
    %14 = tpu.dynamic_rotate %13 by %c1_i32_5 dim 1 : vector<1x128xi32>, i32 -> vector<1x128xi32>
    %c1_i32_6 = arith.constant 1 : i32
    %15 = vector.broadcast %c1_i32_6 : i32 to vector<1x128xi32>
    %16 = arith.xori %13, %15 : vector<1x128xi32>
    %17 = arith.cmpi eq, %14, %16 : vector<1x128xi32>
    %c1_i32_7 = arith.constant 1 : i32
    %18 = tpu.dynamic_rotate %12 by %c1_i32_7 dim 1 : vector<8x128xf32>, i32 -> vector<8x128xf32>
    %19 = arith.addf %12, %18 : vector<8x128xf32>
    %20 = math.sqrt %19 : vector<8x128xf32>
    %cst_8 = arith.constant 2.000000e+00 : f32
    %21 = vector.broadcast %cst_8 : f32 to vector<8x128xf32>
    %22 = arith.subf %21, %20 : vector<8x128xf32>
    %cst_9 = arith.constant 0.000000e+00 : f32
    %23 = vector.broadcast %cst_9 : f32 to vector<8x128xf32>
    %24 = arith.maximumf %22, %23 : vector<8x128xf32>
    %c0_i32_10 = arith.constant 0 : i32
    %25 = arith.cmpi slt, %1, %c0_i32_10 : i32
    %26 = arith.extui %25 : i1 to i32
    %c0_i32_11 = arith.constant 0 : i32
    %27 = arith.cmpi ne, %26, %c0_i32_11 : i32
    scf.if %27 {
      %cst_14 = arith.constant 0.000000e+00 : f32
      %31 = vector.shape_cast %17 : vector<1x128xi1> to vector<1x128xi1>
      %32 = vector.broadcast %31 : vector<1x128xi1> to vector<8x128xi1>
      %33 = vector.broadcast %cst_14 : f32 to vector<8x128xf32>
      %34 = arith.select %32, %24, %33 : vector<8x128xi1>, vector<8x128xf32>
      %c0_15 = arith.constant 0 : index
      %c0_16 = arith.constant 0 : index
      %c0_17 = arith.constant 0 : index
      %35 = vector.load %arg4[%c0_15, %c0_16, %c0_17] : memref<1x8x128xf32, #tpu.memory_space<vmem>>, vector<1x8x128xf32>
      %36 = vector.shape_cast %35 : vector<1x8x128xf32> to vector<8x128xf32>
      %37 = arith.addf %36, %34 : vector<8x128xf32>
      %c0_18 = arith.constant 0 : index
      %c0_19 = arith.constant 0 : index
      %c0_20 = arith.constant 0 : index
      %38 = vector.load %arg4[%c0_18, %c0_19, %c0_20] : memref<1x8x128xf32, #tpu.memory_space<vmem>>, vector<1x8x128xf32>
      %39 = vector.shape_cast %38 : vector<1x8x128xf32> to vector<8x128xf32>
      %40 = vector.shape_cast %37 : vector<8x128xf32> to vector<1x8x128xf32>
      tpu.vector_store %arg4[%c0_18, %c0_19, %c0_20], %40 {strides = array<i32>} : memref<1x8x128xf32, #tpu.memory_space<vmem>>, vector<1x8x128xf32>,
    } else {
    }
    %c0_i32_12 = arith.constant 0 : i32
    %28 = arith.cmpi sge, %1, %c0_i32_12 : i32
    %29 = arith.extui %28 : i1 to i32
    %c0_i32_13 = arith.constant 0 : i32
    %30 = arith.cmpi ne, %29, %c0_i32_13 : i32
    scf.if %30 {
      %31 = tpu.iota {dimensions = array<i32: 0>} : vector<8x1xi32>
      %c8_i32 = arith.constant 8 : i32
      %32 = arith.muli %1, %c8_i32 : i32
      %33 = vector.broadcast %32 : i32 to vector<8x1xi32>
      %34 = arith.addi %33, %31 : vector<8x1xi32>
      %c128_i32 = arith.constant 128 : i32
      %35 = vector.broadcast %c128_i32 : i32 to vector<8x1xi32>
      %36 = arith.muli %34, %35 : vector<8x1xi32>
      %37 = vector.broadcast %36 : vector<8x1xi32> to vector<8x128xi32>
      %38 = vector.broadcast %13 : vector<1x128xi32> to vector<8x128xi32>
      %39 = arith.addi %37, %38 : vector<8x128xi32>
      %c16_i32 = arith.constant 16 : i32
      %40 = vector.broadcast %c16_i32 : i32 to vector<8x128xi32>
      %41 = arith.cmpi slt, %39, %40 : vector<8x128xi32>
      %42 = vector.broadcast %17 : vector<1x128xi1> to vector<8x128xi1>
      %43 = arith.andi %42, %41 : vector<8x128xi1>
      %cst_14 = arith.constant 0.000000e+00 : f32
      %44 = vector.broadcast %cst_14 : f32 to vector<8x128xf32>
      %45 = arith.select %43, %24, %44 : vector<8x128xi1>, vector<8x128xf32>
      %c0_15 = arith.constant 0 : index
      %c0_16 = arith.constant 0 : index
      %c0_17 = arith.constant 0 : index
      %46 = vector.load %arg4[%c0_15, %c0_16, %c0_17] : memref<1x8x128xf32, #tpu.memory_space<vmem>>, vector<1x8x128xf32>
      %47 = vector.shape_cast %46 : vector<1x8x128xf32> to vector<8x128xf32>
      %48 = arith.addf %47, %45 : vector<8x128xf32>
      %c0_18 = arith.constant 0 : index
      %c0_19 = arith.constant 0 : index
      %c0_20 = arith.constant 0 : index
      %49 = vector.load %arg4[%c0_18, %c0_19, %c0_20] : memref<1x8x128xf32, #tpu.memory_space<vmem>>, vector<1x8x128xf32>
      %50 = vector.shape_cast %49 : vector<1x8x128xf32> to vector<8x128xf32>
      %51 = vector.shape_cast %48 : vector<8x128xf32> to vector<1x8x128xf32>
      tpu.vector_store %arg4[%c0_18, %c0_19, %c0_20], %51 {strides = array<i32>} : memref<1x8x128xf32, #tpu.memory_space<vmem>>, vector<1x8x128xf32>,
    } else {
    }
    return
  }
  func.func @transform_0(%arg0: i32, %arg1: i32) -> (i32, i32) {
    %c1_i32 = arith.constant 1 : i32
    %0 = arith.muli %arg0, %c1_i32 : i32
    %1 = arith.addi %0, %arg1 : i32
    %c0_i32 = arith.constant 0 : i32
    %c0_i32_0 = arith.constant 0 : i32
    return %1, %c0_i32 : i32, i32
  }
  func.func @transform_1(%arg0: i32, %arg1: i32) -> (i32, i32) {
    %c1_i32 = arith.constant 1 : i32
    %0 = arith.muli %arg0, %c1_i32 : i32
    %1 = arith.addi %0, %arg1 : i32
    %c0_i32 = arith.constant 0 : i32
    %c0_i32_0 = arith.constant 0 : i32
    return %1, %c0_i32 : i32, i32
  }
  func.func @transform_2(%arg0: i32, %arg1: i32) -> (i32, i32, i32) {
    %c0_i32 = arith.constant 0 : i32
    %c0_i32_0 = arith.constant 0 : i32
    %c0_i32_1 = arith.constant 0 : i32
    return %arg0, %c0_i32, %c0_i32_0 : i32, i32, i32
  }
}

</mosaic_0001>

<bundles_post_ra>
// kernel: tpu_custom_call.1
= control target key start
LH: loop header
LB: loop body
LE: loop exit
PB: predicated region body
PF: predicated region fallthrough
CT: control target
= control target key end

     0   :  { %7 = vsyncpa [#allocation3], 0  ;;  %s230_s0 = inlined_call_operand.hbm [shape: f32[8,128], index: 0, kind: input, shape index: {}]   ;;  %s231_s1 = inlined_call_operand.hbm [shape: f32[8,128], index: 1, kind: input, shape index: {}]   ;;  %s232_s2 = inlined_call_operand.hbm [shape: f32[1,8,128], index: 2, kind: output, shape index: {}]  }
   0x1   :  { %8 = vsyncpa [#allocation6], 0 }
   0x2   :  { %9 = vsyncpa [#allocation4], 0  ;;  %s201_s9 = smov [#allocation2]   ;;  %s202_s11 = smov [#allocation5]  }
   0x3   :  { %s19_s10 = sshll.u32 %s201_s9, 4  ;;  %s32_s12 = sshll.u32 %s202_s11, 4  ;;  %s20_s10 = int_to_ptr.vmem [resolvable:$true] %s19_s10  ;;  %s33_s12 = int_to_ptr.vmem [resolvable:$true] %s32_s12 }
   0x4   :  { %s143_s13 = scalar_lea.vmem %s20_s10, 128  ;;  %p148_p1 = scmp.lt.s32.totalorder %s20_s10, %s20_s10 }
   0x5   :  { %p144_p0 = scmp.ne.s32.totalorder %s20_s10, %s143_s13  ;;  %p149_p2 = scmp.lt.s32.totalorder %s143_s13, %s143_s13 }
   0x7   :  { %p150_p3 = por %p149_p2, %p148_p1 }
   0x9   :  { %p151_p4 = pnand %p150_p3, %p144_p0 }
   0xb   :  { %154 = shalt.err (!%p151_p4)
}
   0xc   :  { %22 = dma.hbm_to_vmem [thread:$0]  %s230_s0, 128, %s20_s10, [#allocation3]  }
   0xd   :  { %s163_s16 = scalar_lea.vmem %s33_s12, 128  ;;  %p168_p6 = scmp.lt.s32.totalorder %s33_s12, %s33_s12 }
   0xe   :  { %p164_p5 = scmp.ne.s32.totalorder %s33_s12, %s163_s16  ;;  %p169_p7 = scmp.lt.s32.totalorder %s163_s16, %s163_s16 }
  0x10   :  { %p170_p8 = por %p169_p7, %p168_p6 }
  0x12   :  { %p171_p9 = pnand %p170_p8, %p164_p5 }
  0x14   :  { %174 = shalt.err (!%p171_p9)
}
  0x15   :  { %35 = dma.hbm_to_vmem [thread:$0]  %s231_s1, 128, %s33_s12, [#allocation6]  }
  0x16   :  { %195 = dma.done.wait [#allocation3], 128  }
  0x17   :  { %196 = vsyncadd [#allocation3], 4294967168 }
  0x18   :  { %197 = dma.done.wait [#allocation6], 128  }
  0x19   :  { %198 = vsyncadd [#allocation6], 4294967168  ;;  %v50_v0 = vld [vmem:[#allocation2] sm:$0xff]  ;;  %v51_v1 = vld [vmem:[#allocation5] sm:$0xff]  ;;  %v56_v5 = vlaneseq  ;;  %s203_s0 = smov 1   ;;  %v204_v16 = vmov 0  }
  0x1a   :  { %v52_v2 = vsub.f32 %v50_v0, %v51_v1  ;;  %s205_s1 = smov [#allocation7]  }
  0x1b   :  { %v57_v7 = vand.u32 127, %v56_v5  ;;  %v93_v8 = vshrl.u32 %v56_v5, 7  ;;  %s117_s19 = sshll.u32 %s205_s1, 4  ;;  %s118_s19 = int_to_ptr.vmem [resolvable:$true] %s117_s19 }
  0x1c   :  { %v53_v3 = vmul.f32 10.0, %v52_v2  ;;  %s175_s20 = scalar_lea.vmem %s118_s19, 128  ;;  %p180_p11 = scmp.lt.s32.totalorder %s118_s19, %s118_s19 }
  0x1d   :  { %v97_v9 = vmul.u32 128, %v93_v8  ;;  %v60_v13 = vxor.u32 1, %v57_v7  ;;  %v103_v14 = vsub.s32 0, %v93_v8  ;;  %p176_p10 = scmp.ne.s32.totalorder %s118_s19, %s175_s20  ;;  %p181_p12 = scmp.lt.s32.totalorder %s175_s20, %s175_s20 }
  0x1e   :  { %v54_v4 = vadd.f32 1e-06, %v53_v3 }
  0x1f   :  { %v98_v10 = vadd.s32 %v97_v9, %v57_v7  ;;  %p182_p13 = por %p181_p12, %p180_p11 }
  0x20   :  { %v55_v6 = vmul.f32 %v54_v4, %v54_v4 }
  0x21   :  { %vm99_vm1 = vcmp.lt.s32.totalorder %v98_v10, 16  ;;  %p183_p0 = pnand %p182_p13, %p176_p10 }
  0x22   :  { %62 = vrot.lane.b32.xlu0 %v55_v6, %s203_s0 }
  0x26   :  { %58 = vrot.lane.b32.xlu0 %v57_v7, %s203_s0 }
  0x94   :  { %v63_v11 = vpop.permute.xlu0 %62 }
  0x95   :  { %v64_v12 = vadd.f32 %v63_v11, %v55_v6 }
  0x97   :  { %133 = vrsqrt.f32 %v64_v12  ;;  %vm67_vm4 = vcmp.eq.f32.partialorder %v64_v12, inf  ;;  %v70_v21 = vand.u32 2147483648, %v64_v12  ;;  %vm69_vm5 = vcmp.eq.f32.partialorder %v64_v12, 0.0 }
  0x98   :  { %v59_v15 = vpop.permute.xlu0 %58 }
  0x99   :  { %vm61_vm0 = vcmp.eq.s32.totalorder %v59_v15, %v60_v13 }
  0x9a   :  { %v100_v17 = vsel %vm61_vm0, 1, %v204_v16 }
  0x9b   :  { %v104_v18 = vrot.slane %v100_v17, %v103_v14 }
  0x9d   :  { %vm105_vm2 = vcmp.eq.s32.totalorder %v104_v18, 1 }
  0x9e   :  { %vm106_vm3 = vmand %vm105_vm2, %vm99_vm1 }
  0xa4   :  { %v134_v19 = vpop.eup %133 }
  0xa5   :  { %v66_v20 = vmul.f32 %v134_v19, %v64_v12 }
  0xa7   :  { %v68_v22 = vsel %vm67_vm4, %v64_v12, %v66_v20 }
  0xa8   :  { %v71_v23 = vsel %vm69_vm5, %v70_v21, %v68_v22 }
  0xa9   :  { %v72_v24 = vsub.f32 2.0, %v71_v23 }
  0xab   :  { %v73_v25 = vmax.f32 %v72_v24, 0.0 }
  0xad   :  { %v107_v26 = vsel %vm106_vm3, %v73_v25, 0.0 }
  0xae   :  { %110 = vst [vmem:[#allocation7] sm:$0xff] %v107_v26 }
  0xaf   :  { %186 = shalt.err (!%p183_p0)
}
  0xb0   :  { %120 = dma.vmem_to_hbm [thread:$0]  %s118_s19, 128, %s232_s2, [#allocation4]  }
  0xb1   :  { %199 = dma.done.wait [#allocation4], 128  }
  0xb2   :  { %200 = vsyncadd [#allocation4], 4294967168 }
  0xb3   :  { %124 = vsyncpa [#allocation3], 1 }
  0xb4   :  { %125 = vsyncpa [#allocation6], 1 }
  0xb5   :  { %126 = vsyncpa [#allocation4], 1 }

</bundles_post_ra>
